<compile_context>
chip_gen: v7x
topology: tpu7x:2x2x1
jax: 0.10.0
libtpu: 0.0.40
codegen_flags: <defaults>
</compile_context>

<pallas_src>
import functools

import jax
import jax.numpy as jnp
from jax.experimental import pallas as pl
from jax.experimental.pallas import tpu as pltpu


def _round_up(n, m):
    return ((n + m - 1) // m) * m


def _vmem_cap_bytes():
    """Per-generation VMEM budget: ~3/4 of physical, never above 100 MiB.

    v5e/v6e (128 MiB physical) -> 96 MiB; v7x (64 MiB) -> 48 MiB.  Falls back
    to the conservative v7x number if the hardware query is unavailable.
    """
    physical = 64 << 20
    try:
        info = pltpu.get_tpu_info()
        physical = int(getattr(info, "vmem_capacity_bytes", physical))
    except Exception:
        pass
    return min((physical * 3) // 4, 100 << 20)


def _footprint_bytes(tile_rows, d, itemsize):
    io = 4 * tile_rows * d * itemsize      # 2 in + 2 out blocks (double-buffered)
    temps = 3 * tile_rows * d * 4          # f32 intermediates in the body
    params = 8 * d * 4                     # gamma / beta (generous)
    return io + temps + params


def _layernorm_kernel(x_ref, gamma_ref, beta_ref, o_ref, *, epsilon, feat,
                      elementwise_f32):
    # x_ref: (tile_rows, D); gamma_ref/beta_ref: (1, D); o_ref: (tile_rows, D)
    x = x_ref[...]
    xf = x.astype(jnp.float32)
    mean = jnp.mean(xf, axis=-1, keepdims=True)
    diff = xf - mean
    # unbiased variance (ddof=1), matching torch.Tensor.std() default
    var = jnp.sum(diff * diff, axis=-1, keepdims=True) * jnp.float32(
        1.0 / (feat - 1))
    # One per-row exact reciprocal (shape (tile_rows, 1)), then broadcast muls.
    inv = 1.0 / (jnp.sqrt(var) + jnp.float32(epsilon))
    if elementwise_f32:
        y = (diff * inv * gamma_ref[...].astype(jnp.float32)
             + beta_ref[...].astype(jnp.float32))
    else:
        # Sub-32-bit I/O: reductions stayed f32; do the normalize/affine in
        # the I/O dtype (native bf16 VPU on v6e/v7x) to cut temp footprint.
        dt = o_ref.dtype
        y = (diff.astype(dt) * inv.astype(dt) * gamma_ref[...].astype(dt)
             + beta_ref[...].astype(dt))
    o_ref[...] = y.astype(o_ref.dtype)


def layer_norm(x, gamma, beta, epsilon=1e-6, *, tile_rows=None,
               target_block_bytes=4 << 20):
    """x: [B, L, D]; gamma, beta: [D]. Returns [B, L, D] in x.dtype."""
    B, L, D = x.shape
    if D < 2:
        raise ValueError("Unbiased std (torch .std(), ddof=1) requires D >= 2.")
    rows = B * L
    x2 = x.reshape(rows, D)
    gamma2 = gamma.reshape(1, D)
    beta2 = beta.reshape(1, D)

    itemsize = jnp.dtype(x.dtype).itemsize
    row_align = max(8, 32 // itemsize)          # sublane packing: 8 f32, 16 bf16
    elementwise_f32 = itemsize >= 4

    # --- tile sizing: big rectangular DMAs for a mem-bound streaming kernel --
    if tile_rows is None:
        tile_rows = max(row_align, target_block_bytes // max(1, D * itemsize))
    tile_rows = _round_up(int(tile_rows), row_align)

    # v7x megacore: the "parallel" axis only uses both TensorCores with >= 2
    # (ideally >= 4) grid steps; clamp the tile when there are enough rows.
    min_steps = 4
    if rows >= min_steps * row_align:
        tile_rows = min(tile_rows, _round_up(-(-rows // min_steps), row_align))

    # VMEM budget (I/O double-buffers + f32 temps) vs. per-generation cap.
    cap = _vmem_cap_bytes()
    headroom = 8 << 20
    while (tile_rows > row_align
           and _footprint_bytes(tile_rows, D, itemsize) + headroom > cap):
        tile_rows = max(row_align, _round_up(tile_rows // 2, row_align))

    if tile_rows >= rows:
        tile_rows = rows          # single block == full array (any row count)
    grid = pl.cdiv(rows, tile_rows)   # ragged last block handled by Pallas

    vmem_limit = int(min(cap, max(16 << 20,
                                  _footprint_bytes(tile_rows, D, itemsize)
                                  + headroom)))

    kernel = functools.partial(_layernorm_kernel, epsilon=float(epsilon),
                               feat=D, elementwise_f32=elementwise_f32)

    row_spec = pl.BlockSpec((tile_rows, D), lambda i: (i, 0))
    vec_spec = pl.BlockSpec((1, D), lambda i: (0, 0))

    out = pl.pallas_call(
        kernel,
        out_shape=jax.ShapeDtypeStruct((rows, D), x.dtype),
        grid_spec=pltpu.PrefetchScalarGridSpec(
            num_scalar_prefetch=0,
            grid=(grid,),
            in_specs=[row_spec, vec_spec, vec_spec],
            out_specs=row_spec,
        ),
        compiler_params=pltpu.CompilerParams(
            dimension_semantics=("parallel",),
            vmem_limit_bytes=vmem_limit,
        ),
        cost_estimate=pl.CostEstimate(
            flops=int(8 * rows * D),
            transcendentals=int(2 * rows),
            bytes_accessed=int(2 * rows * D * itemsize + 2 * D * itemsize),
        ),
    )(x2, gamma2, beta2)

    return out.reshape(B, L, D)


if __name__ == "__main__":
    def ref_layer_norm(xv, g, b, eps):
        xf = xv.astype(jnp.float32)
        mean = jnp.mean(xf, axis=-1, keepdims=True)
        var = jnp.sum((xf - mean) ** 2, axis=-1, keepdims=True) / (xv.shape[-1] - 1)
        std = jnp.sqrt(var)
        return g.astype(jnp.float32) * (xf - mean) / (std + eps) + b.astype(jnp.float32)

    # 1) The module's own shape: [B=2, L=8, D=32], f32, params = ones/zeros.
    B, L, D = 2, 8, 32
    x = jax.random.normal(jax.random.PRNGKey(0), (B, L, D), dtype=jnp.float32)
    gamma = jnp.ones((D,), dtype=jnp.float32)
    beta = jnp.zeros((D,), dtype=jnp.float32)
    y = layer_norm(x, gamma, beta, epsilon=1e-6)
    jax.block_until_ready(y)
    assert jnp.allclose(y, ref_layer_norm(x, gamma, beta, 1e-6),
                        atol=1e-5, rtol=1e-5), "f32 D=32 mismatch"

    # 2) Ragged grid (rows % tile_rows != 0), lane-dense D=128, non-trivial
    #    affine: checks that padded-row garbage never escapes the masked store.
    x2 = jax.random.normal(jax.random.PRNGKey(1), (2, 37, 128), dtype=jnp.float32)
    g2 = jax.random.normal(jax.random.PRNGKey(2), (128,), dtype=jnp.float32)
    b2 = jax.random.normal(jax.random.PRNGKey(3), (128,), dtype=jnp.float32)
    y2 = layer_norm(x2, g2, b2, epsilon=1e-6, tile_rows=16)
    jax.block_until_ready(y2)
    assert jnp.allclose(y2, ref_layer_norm(x2, g2, b2, 1e-6),
                        atol=1e-5, rtol=1e-5), "ragged f32 mismatch"

    # 3) bf16 I/O: reductions in f32, normalize/affine in bf16.
    x3 = jax.random.normal(jax.random.PRNGKey(4), (2, 8, 128),
                           dtype=jnp.float32).astype(jnp.bfloat16)
    g3 = jnp.ones((128,), dtype=jnp.bfloat16)
    b3 = jnp.zeros((128,), dtype=jnp.bfloat16)
    y3 = layer_norm(x3, g3, b3, epsilon=1e-6)
    jax.block_until_ready(y3)
    assert jnp.allclose(y3.astype(jnp.float32), ref_layer_norm(x3, g3, b3, 1e-6),
                        atol=3e-2, rtol=3e-2), "bf16 mismatch"

    print("KERNEL_OK")
</pallas_src>

<mosaic_0001>
module attributes {stable_mosaic.version = 11 : i64} {
  func.func @_layernorm_kernel(%arg0: i32, %arg1: memref<16x32xf32, #tpu.memory_space<vmem>>, %arg2: memref<1x32xf32, #tpu.memory_space<vmem>>, %arg3: memref<1x32xf32, #tpu.memory_space<vmem>>, %arg4: memref<16x32xf32, #tpu.memory_space<vmem>>) attributes {dimension_semantics = [#tpu.dimension_semantics<parallel>], iteration_bounds = array<i64: 1>, scalar_prefetch = 0 : i64, scratch_operands = 0 : i64, tpu.core_type = #tpu.core_type<tc>, window_params = [{transform_indices = @transform_0, window_bounds = array<i64: 16, 32>}, {pipeline_mode = #tpu.pipeline_mode<synchronous>, transform_indices = @transform_1, window_bounds = array<i64: 1, 32>}, {pipeline_mode = #tpu.pipeline_mode<synchronous>, transform_indices = @transform_2, window_bounds = array<i64: 1, 32>}, {transform_indices = @transform_3, window_bounds = array<i64: 16, 32>}]} {
    %c0 = arith.constant 0 : index
    %c0_0 = arith.constant 0 : index
    %0 = vector.load %arg1[%c0, %c0_0] : memref<16x32xf32, #tpu.memory_space<vmem>>, vector<16x32xf32>
    %cst = arith.constant dense<0.000000e+00> : vector<16xf32>
    %1 = vector.multi_reduction <add>, %0, %cst [1] : vector<16x32xf32> to vector<16xf32>
    %2 = vector.shape_cast %1 : vector<16xf32> to vector<16x1xf32>
    %cst_1 = arith.constant 3.200000e+01 : f32
    %3 = vector.broadcast %cst_1 : f32 to vector<16x1xf32>
    %4 = arith.divf %2, %3 : vector<16x1xf32>
    %5 = vector.broadcast %4 : vector<16x1xf32> to vector<16x32xf32>
    %6 = arith.subf %0, %5 : vector<16x32xf32>
    %7 = arith.mulf %6, %6 : vector<16x32xf32>
    %cst_2 = arith.constant dense<0.000000e+00> : vector<16xf32>
    %8 = vector.multi_reduction <add>, %7, %cst_2 [1] : vector<16x32xf32> to vector<16xf32>
    %9 = vector.shape_cast %8 : vector<16xf32> to vector<16x1xf32>
    %cst_3 = arith.constant 0.0322580636 : f32
    %10 = vector.broadcast %cst_3 : f32 to vector<16x1xf32>
    %11 = arith.mulf %9, %10 : vector<16x1xf32>
    %12 = math.sqrt %11 : vector<16x1xf32>
    %cst_4 = arith.constant 9.99999997E-7 : f32
    %13 = vector.broadcast %cst_4 : f32 to vector<16x1xf32>
    %14 = arith.addf %12, %13 : vector<16x1xf32>
    %cst_5 = arith.constant 1.000000e+00 : f32
    %15 = vector.broadcast %cst_5 : f32 to vector<16x1xf32>
    %16 = arith.divf %15, %14 : vector<16x1xf32>
    %17 = vector.broadcast %16 : vector<16x1xf32> to vector<16x32xf32>
    %18 = arith.mulf %6, %17 : vector<16x32xf32>
    %c0_6 = arith.constant 0 : index
    %c0_7 = arith.constant 0 : index
    %19 = vector.load %arg2[%c0_6, %c0_7] : memref<1x32xf32, #tpu.memory_space<vmem>>, vector<1x32xf32>
    %20 = vector.broadcast %19 : vector<1x32xf32> to vector<16x32xf32>
    %21 = arith.mulf %18, %20 : vector<16x32xf32>
    %c0_8 = arith.constant 0 : index
    %c0_9 = arith.constant 0 : index
    %22 = vector.load %arg3[%c0_8, %c0_9] : memref<1x32xf32, #tpu.memory_space<vmem>>, vector<1x32xf32>
    %23 = vector.broadcast %22 : vector<1x32xf32> to vector<16x32xf32>
    %24 = arith.addf %21, %23 : vector<16x32xf32>
    %c0_10 = arith.constant 0 : index
    %c0_11 = arith.constant 0 : index
    %25 = vector.load %arg4[%c0_10, %c0_11] : memref<16x32xf32, #tpu.memory_space<vmem>>, vector<16x32xf32>
    tpu.vector_store %arg4[%c0_10, %c0_11], %24 {strides = array<i32>} : memref<16x32xf32, #tpu.memory_space<vmem>>, vector<16x32xf32>,
    return
  }
  func.func @transform_0(%arg0: i32) -> (i32, i32) {
    %c0_i32 = arith.constant 0 : i32
    %c0_i32_0 = arith.constant 0 : i32
    return %arg0, %c0_i32 : i32, i32
  }
  func.func @transform_1(%arg0: i32) -> (i32, i32) {
    %c0_i32 = arith.constant 0 : i32
    %c0_i32_0 = arith.constant 0 : i32
    %c0_i32_1 = arith.constant 0 : i32
    return %c0_i32, %c0_i32_0 : i32, i32
  }
  func.func @transform_2(%arg0: i32) -> (i32, i32) {
    %c0_i32 = arith.constant 0 : i32
    %c0_i32_0 = arith.constant 0 : i32
    %c0_i32_1 = arith.constant 0 : i32
    return %c0_i32, %c0_i32_0 : i32, i32
  }
  func.func @transform_3(%arg0: i32) -> (i32, i32) {
    %c0_i32 = arith.constant 0 : i32
    %c0_i32_0 = arith.constant 0 : i32
    return %arg0, %c0_i32 : i32, i32
  }
}

</mosaic_0001>

<bundles_post_ra>
// kernel: tpu_custom_call.1
= control target key start
LH: loop header
LB: loop body
LE: loop exit
PB: predicated region body
PF: predicated region fallthrough
CT: control target
= control target key end

     0   :  { %8 = vsyncpa [#allocation3], 0  ;;  %s240_s0 = inlined_call_operand.hbm [shape: f32[16,32], index: 0, kind: input, shape index: {}]   ;;  %s241_s1 = inlined_call_operand.vmem [shape: f32[1,32], index: 1, kind: input, shape index: {}]   ;;  %s242_s2 = inlined_call_operand.vmem [shape: f32[1,32], index: 2, kind: input, shape index: {}]   ;;  %s243_s3 = inlined_call_operand.hbm [shape: f32[16,32], index: 3, kind: output, shape index: {}]  }
   0x1   :  { %9 = vsyncpa [#allocation4], 0  ;;  %s174_s12 = smov [#allocation2]   ;;  %s126_s16 = scalar_lea.hbm %s240_s0, 256 }
   0x2   :  { %s15_s13 = sshll.u32 %s174_s12, 4  ;;  %p127_p0 = scmp.ne.s32.totalorder %s240_s0, %s126_s16  ;;  %s16_s13 = int_to_ptr.vmem [resolvable:$true] %s15_s13 }
   0x3   :  { %p130_p1 = scmp.lt.u32.totalorder %s126_s16, %s240_s0 }
   0x5   :  { %p132_p2 = pnand %p130_p1, %p127_p0 }
   0x7   :  { %135 = shalt.err (!%p132_p2)
}
   0x8   :  { %s136_s21 = scalar_lea.vmem %s16_s13, 256  ;;  %p141_p4 = scmp.lt.s32.totalorder %s16_s13, %s16_s13 }
   0x9   :  { %p137_p3 = scmp.ne.s32.totalorder %s16_s13, %s136_s21  ;;  %p142_p5 = scmp.lt.s32.totalorder %s136_s21, %s136_s21 }
   0xb   :  { %p143_p6 = por %p142_p5, %p141_p4 }
   0xd   :  { %p144_p7 = pnand %p143_p6, %p137_p3 }
   0xf   :  { %147 = shalt.err (!%p144_p7)
}
  0x10   :  { %s175_s22 = smov 128   ;;  %s176_s23 = smov 8  }
  0x11   :  { %21 = dma.hbm_to_vmem [thread:$0]  %s240_s0, 256, %s16_s13, [#allocation3], %s175_s22, %s175_s22, %s176_s23  }
  0x12   :  { %170 = dma.done.wait [#allocation3], 256  }
  0x13   :  { %171 = vsyncadd [#allocation3], 4294967040  ;;  %vm31_vm0 = vcmask 261120   ;;  %v29_v0 = vld [vmem:[#allocation2] sm:$0xff]  ;;  %v30_v1 = vld [vmem:[#allocation2 + $0x8] sm:$0xff]  ;;  %s177_s29 = smov [#allocation5]  }
  0x14   :  { %v32_v2 = vsel %vm31_vm0, %v29_v0, 0.0  ;;  %v35_v3 = vsel %vm31_vm0, %v30_v1, 0.0  ;;  %v112_v31 = vld [vmem:[%s241_s1] ss:$0 sm:$0xff]  ;;  %s100_s30 = sshll.u32 %s177_s29, 4  ;;  %s101_s30 = int_to_ptr.vmem [resolvable:$true] %s100_s30 }
  0x15   :  { %33 = vadd.xlane.f32.xlu0 %v32_v2  ;;  %v113_v33 = vld [vmem:[%s242_s2] ss:$0 sm:$0xff]  ;;  %s148_s4 = scalar_lea.vmem %s101_s30, 256  ;;  %p153_p9 = scmp.lt.s32.totalorder %s101_s30, %s101_s30 }
  0x16   :  { %p149_p8 = scmp.ne.s32.totalorder %s101_s30, %s148_s4  ;;  %p154_p10 = scmp.lt.s32.totalorder %s148_s4, %s148_s4 }
  0x18   :  { %p155_p11 = por %p154_p10, %p153_p9 }
  0x19   :  { %36 = vadd.xlane.f32.xlu0 %v35_v3 }
  0x1a   :  { %p156_p12 = pnand %p155_p11, %p149_p8 }
  0xa2   :  { %v34_v4 = vpop.xlane.xlu0 %33 }
  0xa3   :  { %v39_v5 = vmul.f32 0.03125, %v34_v4 }
  0xa5   :  { %v41_v6 = vsub.f32 %v29_v0, %v39_v5 }
  0xa6   :  { %v37_v7 = vpop.xlane.xlu0 %36 }
  0xa7   :  { %v40_v8 = vmul.f32 0.03125, %v37_v7  ;;  %v43_v9 = vmul.f32 %v41_v6, %v41_v6 }
  0xa9   :  { %v42_v10 = vsub.f32 %v30_v1, %v40_v8  ;;  %v45_v11 = vsel %vm31_vm0, %v43_v9, 0.0 }
  0xaa   :  { %46 = vadd.xlane.f32.xlu1 %v45_v11 }
  0xab   :  { %v44_v12 = vmul.f32 %v42_v10, %v42_v10 }
  0xad   :  { %v48_v13 = vsel %vm31_vm0, %v44_v12, 0.0 }
  0xae   :  { %49 = vadd.xlane.f32.xlu1 %v48_v13 }
 0x137   :  { %v47_v14 = vpop.xlane.xlu1 %46 }
 0x138   :  { %v51_v15 = vmul.f32 0.032258064, %v47_v14 }
 0x13a   :  { %118 = vrsqrt.f32 %v51_v15  ;;  %vm55_vm1 = vcmp.eq.f32.partialorder %v51_v15, inf  ;;  %v58_v20 = vand.u32 2147483648, %v51_v15  ;;  %vm57_vm2 = vcmp.eq.f32.partialorder %v51_v15, 0.0 }
 0x13b   :  { %v50_v16 = vpop.xlane.xlu1 %49 }
 0x13c   :  { %v52_v17 = vmul.f32 0.032258064, %v50_v16 }
 0x13e   :  { %120 = vrsqrt.f32 %v52_v17  ;;  %vm62_vm3 = vcmp.eq.f32.partialorder %v52_v17, inf  ;;  %v65_v26 = vand.u32 2147483648, %v52_v17  ;;  %vm64_vm4 = vcmp.eq.f32.partialorder %v52_v17, 0.0 }
 0x144   :  { %v119_v18 = vpop.eup %118 }
 0x145   :  { %v54_v19 = vmul.f32 %v119_v18, %v51_v15 }
 0x147   :  { %v56_v21 = vsel %vm55_vm1, %v51_v15, %v54_v19 }
 0x148   :  { %v121_v22 = vpop.eup %120  ;;  %v59_v23 = vsel %vm57_vm2, %v58_v20, %v56_v21 }
 0x149   :  { %v67_v24 = vadd.f32 1e-06, %v59_v23  ;;  %v61_v25 = vmul.f32 %v121_v22, %v52_v17 }
 0x14b   :  { %122 = vrcp.f32 %v67_v24  ;;  %v63_v27 = vsel %vm62_vm3, %v52_v17, %v61_v25 }
 0x14c   :  { %v66_v28 = vsel %vm64_vm4, %v65_v26, %v63_v27 }
 0x14d   :  { %v68_v29 = vadd.f32 1e-06, %v66_v28 }
 0x14f   :  { %124 = vrcp.f32 %v68_v29 }
 0x155   :  { %v123_v30 = vpop.eup %122 }
 0x156   :  { %v73_v32 = vmul.f32 %v123_v30, %v41_v6 }
 0x158   :  { %v82_v34 = vmul.f32 %v112_v31, %v73_v32 }
 0x159   :  { %v125_v35 = vpop.eup %124 }
 0x15a   :  { %v74_v36 = vmul.f32 %v125_v35, %v42_v10  ;;  %v91_v37 = vadd.f32 %v113_v33, %v82_v34 }
 0x15c   :  { %v83_v38 = vmul.f32 %v112_v31, %v74_v36  ;;  %93 = vst.msk [vmem:[#allocation5] sm:$0xff] %vm31_vm0, %v91_v37 }
 0x15e   :  { %v92_v39 = vadd.f32 %v113_v33, %v83_v38 }
 0x160   :  { %94 = vst.msk [vmem:[#allocation5 + $0x8] sm:$0xff] %vm31_vm0, %v92_v39 }
 0x161   :  { %159 = shalt.err (!%p156_p12)
}
 0x162   :  { %s160_s5 = scalar_lea.hbm %s243_s3, 256 }
 0x163   :  { %p161_p13 = scmp.ne.s32.totalorder %s243_s3, %s160_s5  ;;  %p164_p0 = scmp.lt.u32.totalorder %s160_s5, %s243_s3 }
 0x165   :  { %p166_p1 = pnand %p164_p0, %p161_p13 }
 0x167   :  { %169 = shalt.err (!%p166_p1)
}
 0x168   :  { %106 = dma.vmem_to_hbm [thread:$0]  %s101_s30, 256, %s243_s3, [#allocation4], %s175_s22, %s175_s22, %s176_s23  }
 0x169   :  { %172 = dma.done.wait [#allocation4], 256  }
 0x16a   :  { %173 = vsyncadd [#allocation4], 4294967040 }
 0x16b   :  { %110 = vsyncpa [#allocation3], 1 }
 0x16c   :  { %111 = vsyncpa [#allocation4], 1 }

</bundles_post_ra>
